<compile_context>
chip_gen: v7x
topology: tpu7x:2x2x1
jax: 0.10.0
libtpu: 0.0.40
codegen_flags: <defaults>
</compile_context>

<pallas_src>
import functools

import jax
import jax.numpy as jnp
from jax.experimental import pallas as pl
from jax.experimental.pallas import tpu as pltpu


def siglip_embed_kernel(x_ref, w_ref, pos_ref, o_ref):
    # x_ref:   (1, tn, K)  bf16 flattened patch pixels      -> MXU LHS
    # w_ref:   (K, D)      bf16 patch-projection weight     -> MXU RHS (resident)
    # pos_ref: (tn, D)     f32 position-emb rows + conv bias (reused across batch)
    # o_ref:   (1, tn, D)  output tile
    acc = jnp.dot(x_ref[0], w_ref[...], preferred_element_type=jnp.float32)
    acc = acc + pos_ref[...]
    o_ref[0] = acc.astype(o_ref.dtype)


def _round_up(x, m):
    return ((x + m - 1) // m) * m


@functools.partial(jax.jit, static_argnames=("patch_size", "tn", "out_dtype"))
def siglip_vision_embeddings(pixel_values, conv_w, conv_b, pos_table, *,
                             patch_size, tn=None, out_dtype=jnp.bfloat16):
    """pixel_values: (B,C,H,W); conv_w: (D,C,P,P); conv_b: (D,); pos_table: (N,D)."""
    B, C, H, W = pixel_values.shape
    P = patch_size
    gh, gw = H // P, W // P
    N = gh * gw
    D = conv_w.shape[0]
    K = C * P * P

    # --- layout plumbing in the wrapper (cast to bf16 FIRST so the extra HBM
    #     pass of the patchify transpose moves half the bytes) ----------------
    # TODO(synk): fully fusing patch extraction into the kernel (BlockSpec over
    # the raw NCHW tensor + in-VMEM relayout) would remove this extra HBM pass.
    x = pixel_values[:, :, :gh * P, :gw * P].astype(jnp.bfloat16)
    x = x.reshape(B, C, gh, P, gw, P)
    x = x.transpose(0, 2, 4, 1, 3, 5).reshape(B, N, K)  # rows=(i,j), cols=(c,kh,kw)

    w2d = conv_w.reshape(D, K).T.astype(jnp.bfloat16)    # (K, D), matches flatten order
    # Fold the conv bias into the position table; keep it f32 — it is only read
    # once per token tile thanks to the grid order, so the bandwidth cost is nil.
    pos = pos_table.astype(jnp.float32) + conv_b.astype(jnp.float32)[None, :]

    # --- K alignment (lane / MXU contraction dim), e.g. patch_size=14 -> 588->640
    Kp = _round_up(K, 128)
    if Kp != K:
        x = jnp.pad(x, ((0, 0), (0, 0), (0, Kp - K)))
        w2d = jnp.pad(w2d, ((0, Kp - K), (0, 0)))

    # --- token tiling: pad N up to a multiple of the tile ---------------------
    if tn is None:
        tn = min(256, _round_up(N, 16))
    assert tn % 16 == 0, tn                             # bf16 sublane alignment
    Np = _round_up(N, tn)
    if Np != N:
        x = jnp.pad(x, ((0, 0), (0, Np - N), (0, 0)))
        pos = jnp.pad(pos, ((0, Np - N), (0, 0)))
    n_tiles = Np // tn

    # --- VMEM budget (generation aware; v7x only has 64 MiB physical) --------
    tile_bytes = (tn * Kp * 2                                   # x tile (bf16)
                  + tn * D * 4                                  # pos tile (f32)
                  + tn * D * jnp.dtype(out_dtype).itemsize)     # out tile
    w_bytes = Kp * D * 2
    need = 2 * (tile_bytes + w_bytes) + (4 << 20)               # double-buffered + headroom
    try:
        cap = pltpu.get_tpu_info().vmem_capacity_bytes
    except Exception:
        cap = 64 << 20                                          # conservative (v7x) fallback
    vmem_limit = int(min(cap - (16 << 20), max(32 << 20, need)))
    vmem_limit = max(vmem_limit, int(need))

    # Grid: (token tiles, batch) with batch INNERMOST -> weight and pos blocks
    # keep the same block index across the inner loop (DMA skipped / resident).
    out = pl.pallas_call(
        siglip_embed_kernel,
        out_shape=jax.ShapeDtypeStruct((B, Np, D), out_dtype),
        grid_spec=pltpu.PrefetchScalarGridSpec(
            num_scalar_prefetch=0,
            grid=(n_tiles, B),
            in_specs=[
                pl.BlockSpec((1, tn, Kp), lambda n, b: (b, n, 0)),  # patch tile
                pl.BlockSpec((Kp, D), lambda n, b: (0, 0)),         # weight (resident)
                pl.BlockSpec((tn, D), lambda n, b: (n, 0)),         # pos+bias (reused over b)
            ],
            out_specs=pl.BlockSpec((1, tn, D), lambda n, b: (b, n, 0)),
        ),
        compiler_params=pltpu.CompilerParams(
            dimension_semantics=("parallel", "parallel"),
            vmem_limit_bytes=vmem_limit),
    )(x, w2d, pos)
    return out[:, :N]


def reference_embeddings(pixel_values, conv_w, conv_b, pos_table, patch_size):
    """Pure-JAX f32 reference matching the PyTorch forward (conv -> flatten -> +pos)."""
    P = patch_size
    out = jax.lax.conv_general_dilated(
        pixel_values, conv_w, window_strides=(P, P), padding="VALID",
        dimension_numbers=("NCHW", "OIHW", "NCHW"))
    out = out + conv_b.reshape(1, -1, 1, 1)
    B, D, gh, gw = out.shape
    out = out.reshape(B, D, gh * gw).transpose(0, 2, 1)   # (B, N, D)
    return out + pos_table[None]


if __name__ == "__main__":
    # Small config consistent with SiglipVisionConfig: hidden_size=128 (lane-
    # dense), num_channels=3, image_size=96, patch_size=16 -> 6x6 = 36 patches.
    batch, channels, image_size, patch_size, hidden = 2, 3, 96, 16, 128
    grid_side = image_size // patch_size
    num_patches = grid_side * grid_side

    key = jax.random.PRNGKey(0)
    kx, kw, kb, kp = jax.random.split(key, 4)
    pixel_values = jax.random.normal(
        kx, (batch, channels, image_size, image_size), jnp.float32)
    conv_w = jax.random.normal(
        kw, (hidden, channels, patch_size, patch_size), jnp.float32) * 0.02
    conv_b = jax.random.normal(kb, (hidden,), jnp.float32) * 0.01
    pos_table = jax.random.normal(kp, (num_patches, hidden), jnp.float32) * 0.02

    # tn=16 -> N=36 padded to 48: exercises token tiling (3 tiles), the padded
    # tail, and the batch-inner pos/weight reuse, even at this tiny demo size.
    out = siglip_vision_embeddings(pixel_values, conv_w, conv_b, pos_table,
                                   patch_size=patch_size, tn=16)
    out = jax.block_until_ready(out)

    ref = reference_embeddings(pixel_values, conv_w, conv_b, pos_table, patch_size)
    assert out.shape == (batch, num_patches, hidden), out.shape
    assert out.dtype == jnp.bfloat16, out.dtype
    err = float(jnp.max(jnp.abs(out.astype(jnp.float32) - ref)))
    # Tolerance covers bf16 MXU inputs + bf16 output vs the full-f32 XLA conv.
    assert err < 6e-2, err

    print("KERNEL_OK")
</pallas_src>

<mosaic_0001>
module attributes {stable_mosaic.version = 11 : i64} {
  func.func @siglip_embed_kernel(%arg0: i32, %arg1: i32, %arg2: memref<1x16x768xbf16, #tpu.memory_space<vmem>>, %arg3: memref<768x128xbf16, #tpu.memory_space<vmem>>, %arg4: memref<16x128xf32, #tpu.memory_space<vmem>>, %arg5: memref<1x16x128xbf16, #tpu.memory_space<vmem>>) attributes {dimension_semantics = [#tpu.dimension_semantics<parallel>, #tpu.dimension_semantics<parallel>], iteration_bounds = array<i64: 3, 2>, scalar_prefetch = 0 : i64, scratch_operands = 0 : i64, tpu.core_type = #tpu.core_type<tc>, window_params = [{transform_indices = @transform_0, window_bounds = array<i64: 1, 16, 768>}, {pipeline_mode = #tpu.pipeline_mode<synchronous>, transform_indices = @transform_1, window_bounds = array<i64: 768, 128>}, {transform_indices = @transform_2, window_bounds = array<i64: 16, 128>}, {transform_indices = @transform_3, window_bounds = array<i64: 1, 16, 128>}]} {
    %c0 = arith.constant 0 : index
    %c0_0 = arith.constant 0 : index
    %c0_1 = arith.constant 0 : index
    %0 = vector.load %arg2[%c0, %c0_0, %c0_1] : memref<1x16x768xbf16, #tpu.memory_space<vmem>>, vector<1x16x768xbf16>
    %1 = vector.shape_cast %0 : vector<1x16x768xbf16> to vector<16x768xbf16>
    %c0_2 = arith.constant 0 : index
    %c0_3 = arith.constant 0 : index
    %2 = vector.load %arg3[%c0_2, %c0_3] : memref<768x128xbf16, #tpu.memory_space<vmem>>, vector<768x128xbf16>
    %cst = arith.constant dense<0.000000e+00> : vector<16x128xf32>
    %3 = tpu.matmul %1, %2, %cst {dimension_numbers = #tpu.dot_dimension_numbers<[1], [0], [0], [1], [0, 0, 1, 1], [], []>} : vector<16x768xbf16>, vector<768x128xbf16>, vector<16x128xf32> -> vector<16x128xf32>
    %c0_4 = arith.constant 0 : index
    %c0_5 = arith.constant 0 : index
    %4 = vector.load %arg4[%c0_4, %c0_5] : memref<16x128xf32, #tpu.memory_space<vmem>>, vector<16x128xf32>
    %5 = arith.addf %3, %4 : vector<16x128xf32>
    %6 = arith.truncf %5 : vector<16x128xf32> to vector<16x128xbf16>
    %c0_6 = arith.constant 0 : index
    %c0_7 = arith.constant 0 : index
    %c0_8 = arith.constant 0 : index
    %7 = vector.load %arg5[%c0_6, %c0_7, %c0_8] : memref<1x16x128xbf16, #tpu.memory_space<vmem>>, vector<1x16x128xbf16>
    %8 = vector.shape_cast %7 : vector<1x16x128xbf16> to vector<16x128xbf16>
    %9 = vector.shape_cast %6 : vector<16x128xbf16> to vector<1x16x128xbf16>
    tpu.vector_store %arg5[%c0_6, %c0_7, %c0_8], %9 {strides = array<i32>} : memref<1x16x128xbf16, #tpu.memory_space<vmem>>, vector<1x16x128xbf16>,
    return
  }
  func.func @transform_0(%arg0: i32, %arg1: i32) -> (i32, i32, i32) {
    %c0_i32 = arith.constant 0 : i32
    %c0_i32_0 = arith.constant 0 : i32
    return %arg1, %arg0, %c0_i32 : i32, i32, i32
  }
  func.func @transform_1(%arg0: i32, %arg1: i32) -> (i32, i32) {
    %c0_i32 = arith.constant 0 : i32
    %c0_i32_0 = arith.constant 0 : i32
    %c0_i32_1 = arith.constant 0 : i32
    return %c0_i32, %c0_i32_0 : i32, i32
  }
  func.func @transform_2(%arg0: i32, %arg1: i32) -> (i32, i32) {
    %c0_i32 = arith.constant 0 : i32
    %c0_i32_0 = arith.constant 0 : i32
    return %arg0, %c0_i32 : i32, i32
  }
  func.func @transform_3(%arg0: i32, %arg1: i32) -> (i32, i32, i32) {
    %c0_i32 = arith.constant 0 : i32
    %c0_i32_0 = arith.constant 0 : i32
    return %arg1, %arg0, %c0_i32 : i32, i32, i32
  }
}

</mosaic_0001>

<bundles_post_ra>
// kernel: siglip_vision_embeddings.1
= control target key start
LH: loop header
LB: loop body
LE: loop exit
PB: predicated region body
PF: predicated region fallthrough
CT: control target
= control target key end

     0   :  { %s1198_s12 = smov 0   ;;  %s1200_s13 = smov 0   ;;  %s1420_s0 = inlined_call_operand.vmem [shape: bf16[2,48,768], index: 0, kind: input, shape index: {}]   ;;  %s1421_s1 = inlined_call_operand.vmem [shape: bf16[768,128], index: 1, kind: input, shape index: {}]   ;;  %s1422_s2 = inlined_call_operand.vmem [shape: f32[48,128], index: 2, kind: input, shape index: {}]   ;;  %s1423_s3 = inlined_call_operand.vmem [shape: bf16[2,48,128], index: 3, kind: output, shape index: {}]  }
   0x1   :  { %s1202_s14 = smov 0   ;;  %s1204_s15 = smov 0  }
   0x2   :  { %s1206_s16 = smov 0  }
   0x3 LB: > { %s22_s17 = sadd.s32 1, %s1168_s14  ;;  %s25_s18 = sadd.s32 1, %s1172_s15  ;;  %s1176_s16 = sphi %s1206_s16, %s13_s16   ;;  %s1172_s15 = sphi %s1204_s15, %s1427_s15   ;;  %s1168_s14 = sphi %s1202_s14, %s1426_s14   ;;  %s1164_s13 = sphi %s1200_s13, %s1425_s13   ;;  %s1160_s12 = sphi %s1198_s12, %s1424_s12  }
   0x4   : > { %p23_p0 = scmp.ge.s32.totalorder %s22_s17, 2  ;;  %p900_p1 = scmp.ge.s32.totalorder %s1176_s16, 1 }
   0x5   : > { %p170_p2 = scmp.lt.s32.totalorder %s1176_s16, 7 }
   0x6   : > { %s1429_s17 = smov (%p23_p0, %s22_s17), 0  ;;  %s1431_s18 = smov (!%p23_p0, %s25_s18), %s1172_s15 }
   0x7   : > { %p171_p3 = pnand %p900_p1, %p170_p2  ;;  %p27_p4 = scmp.ge.s32.totalorder %s1431_s18, 3 }
   0x8   : > { %v1081_v0 = vld [vmem:[%s1421_s1 + $0x40] sm:$0xff] (!%p171_p3)   ;;  %v1085_v4 = vld [vmem:[%s1421_s1 + $0x48] sm:$0xff] (!%p171_p3)   ;;  %s901_s8 = sshll.u32 (!%p171_p3), %s1164_s13, 1  ;;  %v1089_v8 = vld [vmem:[%s1421_s1 + $0x50] sm:$0xff] (!%p171_p3)   ;;  %p209_p5 = scmp.lt.s32.totalorder (!%p171_p3), %s1160_s12, 1 }
   0x9   : > { %s1433_s18 = smov (%p27_p4, %s1431_s18), 0  ;;  %174 = sbr.rel (%p171_p3) target bundleno = 296 (0x128), region = 32 }
   0xa   : > { %v1082_v1 = vld [vmem:[%s1421_s1] sm:$0xff] (!%p171_p3)   ;;  %972 = vmatprep.subr.bf16.mxu0 (!%p171_p3), %v1081_v0  ;;  %v1086_v5 = vld [vmem:[%s1421_s1 + $0x8] sm:$0xff] (!%p171_p3)   ;;  %v1090_v9 = vld [vmem:[%s1421_s1 + $0x10] sm:$0xff] (!%p171_p3)   ;;  %p211_p6 = scmp.lt.s32.totalorder (!%p171_p3), %s901_s8, 5 }
   0xb   : > { %v1083_v2 = vld [vmem:[%s1421_s1 + $0xc0] sm:$0xff] (!%p171_p3)   ;;  %973 = vmatpush3.bf16.msra.mxu0 (!%p171_p3), %v1082_v1  ;;  %v1087_v6 = vld [vmem:[%s1421_s1 + $0xc8] sm:$0xff] (!%p171_p3)   ;;  %v1091_v10 = vld [vmem:[%s1421_s1 + $0xd0] sm:$0xff] (!%p171_p3)  }
   0xc   : > { %v1084_v3 = vld [vmem:[%s1421_s1 + $0x80] sm:$0xff] (!%p171_p3)   ;;  %994 = vmatprep.subr.bf16.mxu1 (!%p171_p3), %v1083_v2  ;;  %974 = vmatprep.subr.bf16.mxu0 (!%p171_p3), %v1085_v4  ;;  %v1088_v7 = vld [vmem:[%s1421_s1 + $0x88] sm:$0xff] (!%p171_p3)   ;;  %v1092_v11 = vld [vmem:[%s1421_s1 + $0x90] sm:$0xff] (!%p171_p3)  }
   0xd   : > { %995 = vmatpush3.bf16.msra.mxu1 (!%p171_p3), %v1084_v3  ;;  %v1093_v12 = vld [vmem:[%s1421_s1 + $0x58] sm:$0xff] (!%p171_p3)   ;;  %v1097_v16 = vld [vmem:[%s1421_s1 + $0x60] sm:$0xff] (!%p171_p3)   ;;  %v1101_v20 = vld [vmem:[%s1421_s1 + $0x68] sm:$0xff] (!%p171_p3)  }
   0xe   : > { %996 = vmatprep.subr.bf16.mxu1 (!%p171_p3), %v1087_v6  ;;  %v1094_v13 = vld [vmem:[%s1421_s1 + $0x18] sm:$0xff] (!%p171_p3)   ;;  %v1098_v17 = vld [vmem:[%s1421_s1 + $0x20] sm:$0xff] (!%p171_p3)   ;;  %v1102_v21 = vld [vmem:[%s1421_s1 + $0x28] sm:$0xff] (!%p171_p3)  }
   0xf   : > { %975 = vmatpush3.bf16.msra.mxu0 (!%p171_p3), %v1086_v5  ;;  %v1095_v14 = vld [vmem:[%s1421_s1 + $0xd8] sm:$0xff] (!%p171_p3)   ;;  %v1099_v18 = vld [vmem:[%s1421_s1 + $0xe0] sm:$0xff] (!%p171_p3)   ;;  %v1103_v22 = vld [vmem:[%s1421_s1 + $0xe8] sm:$0xff] (!%p171_p3)  }
  0x10   : > { %976 = vmatprep.subr.bf16.mxu0 %v1089_v8  ;;  %s1435_s12 = smov (!%p209_p5, %s1160_s12), 1  ;;  %s1437_s8 = smov (!%p211_p6, %s901_s8), 5  ;;  %v1096_v15 = vld [vmem:[%s1421_s1 + $0x98] sm:$0xff]   ;;  %v1100_v19 = vld [vmem:[%s1421_s1 + $0xa0] sm:$0xff]   ;;  %v1104_v23 = vld [vmem:[%s1421_s1 + $0xa8] sm:$0xff]  }
  0x11   : > { %997 = vmatpush3.bf16.msra.mxu1 %v1088_v7  ;;  %s1039_s9 = smul.u32 36, %s1435_s12  ;;  %v1105_v24 = vld [vmem:[%s1421_s1 + $0x70] sm:$0xff]   ;;  %v1109_v28 = vld [vmem:[%s1421_s1 + $0x78] sm:$0xff]   ;;  %v1116_v34 = vld [vmem:[%s1421_s1 + $0x140] sm:$0xff]   ;;  %s904_s24 = sshll.u32 %s1437_s8, 3 }
  0x12   : > { %998 = vmatprep.subr.bf16.mxu1 %v1091_v10  ;;  %s1038_s19 = smul.u32 6, %s1437_s8  ;;  %v1106_v25 = vld [vmem:[%s1421_s1 + $0x30] sm:$0xff]   ;;  %v1110_v29 = vld [vmem:[%s1421_s1 + $0x38] sm:$0xff]   ;;  %v1120_v37 = vld [vmem:[%s1421_s1 + $0x100] sm:$0xff]  }
  0x13   : > { %977 = vmatpush3.bf16.msra.mxu0 %v1090_v9  ;;  %v1107_v26 = vld [vmem:[%s1421_s1 + $0xf0] sm:$0xff]   ;;  %v1111_v30 = vld [vmem:[%s1421_s1 + $0xf8] sm:$0xff]   ;;  %v1121_v38 = vld [vmem:[%s1421_s1 + $0x148] sm:$0xff]  }
  0x14   : > { %978 = vmatprep.subr.bf16.mxu0 %v1093_v12  ;;  %s215_s27 = sadd.s32 %s1039_s9, %s1038_s19  ;;  %v1108_v27 = vld [vmem:[%s1421_s1 + $0xb0] sm:$0xff]   ;;  %v1115_v33 = vld [vmem:[%s1421_s1 + $0xb8] sm:$0xff]   ;;  %v1122_v39 = vld [vmem:[%s1421_s1 + $0x108] sm:$0xff]  }
  0x15   : > { %999 = vmatpush3.bf16.msra.mxu1 %v1092_v11  ;;  %s902_s7 = sshll.u32 %s215_s27, 2  ;;  %v1123_v40 = vld [vmem:[%s1421_s1 + $0x150] sm:$0xff]   ;;  %v1125_v42 = vld [vmem:[%s1421_s1 + $0x158] sm:$0xff]   ;;  %v1127_v44 = vld [vmem:[%s1421_s1 + $0x160] sm:$0xff]   ;;  %s223_s27 = scalar_lea.vmem %s1422_s2, %s904_s24 }
  0x16   : > { %1000 = vmatprep.subr.bf16.mxu1 %v1095_v14  ;;  %s1331_s23 = scalar_lea.vmem %s1420_s0, %s902_s7  ;;  %v1124_v41 = vld [vmem:[%s1421_s1 + $0x110] sm:$0xff]   ;;  %v1126_v43 = vld [vmem:[%s1421_s1 + $0x118] sm:$0xff]   ;;  %v1128_v45 = vld [vmem:[%s1421_s1 + $0x120] sm:$0xff]  }
  0x17   : > { %979 = vmatpush3.bf16.msra.mxu0 %v1094_v13  ;;  %v1112_v31 = vld [vmem:[%s1331_s23] ss:$24 sps:$4 sm:$0xff]   ;;  %v1114_v32 = vld [vmem:[%s1331_s23 + $0x4] ss:$24 sps:$4 sm:$0xff]   ;;  %v1129_v46 = vld [vmem:[%s1421_s1 + $0x168] sm:$0xff]  }
  0x18   : > { %980 = vmatprep.subr.bf16.mxu0 %v1097_v16  ;;  %690 = vmatprep.mubr.bf16.mxu0 %v1114_v32  ;;  %v1117_v35 = vld [vmem:[%s1331_s23 + $0x8] ss:$24 sps:$4 sm:$0xff]   ;;  %v1119_v36 = vld [vmem:[%s1331_s23 + $0xc] ss:$24 sps:$4 sm:$0xff]   ;;  %v1131_v49 = vld [vmem:[%s1421_s1 + $0x170] sm:$0xff]  }
  0x19   : > { %1001 = vmatpush3.bf16.msra.mxu1 %v1096_v15  ;;  %731 = vmatprep.mubr.bf16.mxu1 %v1119_v36  ;;  %v1137_v47 = vld [vmem:[%s1331_s23 + $0x14] ss:$24 sps:$4 sm:$0xff]   ;;  %v1133_v51 = vld [vmem:[%s1421_s1 + $0x178] sm:$0xff]   ;;  %v1135_v53 = vld [vmem:[%s1331_s23 + $0x10] ss:$24 sps:$4 sm:$0xff]   ;;  %s1040_s23 = smul.u32 6, %s1435_s12 }
  0x1a   : > { %1002 = vmatprep.subr.bf16.mxu1 %v1099_v18  ;;  %v1130_v48 = vld [vmem:[%s1421_s1 + $0x128] sm:$0xff]   ;;  %v1132_v50 = vld [vmem:[%s1421_s1 + $0x130] sm:$0xff]   ;;  %v1134_v52 = vld [vmem:[%s1421_s1 + $0x138] sm:$0xff]  }
  0x1b   : > { %981 = vmatpush3.bf16.msra.mxu0 %v1098_v17  ;;  %v338_v55 = vld [vmem:[%s223_s27] sm:$0xff]  ;;  %v339_v60 = vld [vmem:[%s223_s27 + $0x8] sm:$0xff]  ;;  %s231_s28 = sadd.s32 %s1040_s23, %s1437_s8 }
  0x1c   : > { %982 = vmatprep.subr.bf16.mxu0 %v1101_v20  ;;  %s906_s29 = sshll.u32 %s231_s28, 2 }
  0x1d   : > { %1003 = vmatpush3.bf16.msra.mxu1 %v1100_v19  ;;  %s233_s5 = scalar_lea.vmem %s1423_s3, %s906_s29 }
  0x1e   : > { %1004 = vmatprep.subr.bf16.mxu1 %v1103_v22 }
  0x1f   : > { %983 = vmatpush3.bf16.msra.mxu0 %v1102_v21 }
  0x20   : > { %984 = vmatprep.subr.bf16.mxu0 %v1105_v24 }
  0x21   : > { %1005 = vmatpush3.bf16.msra.mxu1 %v1104_v23 }
  0x22   : > { %1006 = vmatprep.subr.bf16.mxu1 %v1107_v26 }
  0x23   : > { %985 = vmatpush3.bf16.msra.mxu0 %v1106_v25 }
  0x24   : > { %986 = vmatprep.subr.bf16.mxu0 %v1109_v28 }
  0x25   : > { %1007 = vmatpush3.bf16.msra.mxu1 %v1108_v27 }
  0x26   : > { %1008 = vmatprep.subr.bf16.mxu1 %v1111_v30 }
  0x27   : > { %987 = vmatpush3.bf16.msra.mxu0 %v1110_v29 }
  0x28   : > { %1016 = vmatprep.subr.bf16.mxu0 %v1116_v34 }
  0x29   : > { %1009 = vmatpush3.bf16.msra.mxu1 %v1115_v33 }
  0x2a   : > { %691 = vmatmul.mubr.bf16.vlgmr.msra.gmra.mrb[0].mxu0 %v1112_v31 }
  0x2b   : > { %1017 = vmatpush3.bf16.msra.mxu0 %v1120_v37  ;;  %772 = vmatprep.mubr.bf16.mxu0 %v1137_v47 }
  0x2c   : > { %732 = vmatmul.mubr.bf16.vlgmr.msra.gmra.mrb[0].mxu1 %v1117_v35  ;;  %1018 = vmatprep.subr.bf16.mxu0 %v1121_v38 }
  0x2f   : > { %1019 = vmatpush3.bf16.msra.mxu0 %v1122_v39 }
  0x30   : > { %1020 = vmatprep.subr.bf16.mxu0 %v1123_v40 }
  0x33   : > { %1021 = vmatpush3.bf16.msra.mxu0 %v1124_v41 }
  0x34   : > { %1022 = vmatprep.subr.bf16.mxu0 %v1125_v42 }
  0x37   : > { %1023 = vmatpush3.bf16.msra.mxu0 %v1126_v43 }
  0x38   : > { %1024 = vmatprep.subr.bf16.mxu0 %v1127_v44 }
  0x3b   : > { %1025 = vmatpush3.bf16.msra.mxu0 %v1128_v45 }
  0x3c   : > { %1026 = vmatprep.subr.bf16.mxu0 %v1129_v46 }
  0x3f   : > { %1027 = vmatpush3.bf16.msra.mxu0 %v1130_v48 }
  0x40   : > { %1028 = vmatprep.subr.bf16.mxu0 %v1131_v49 }
  0x43   : > { %1029 = vmatpush3.bf16.msra.mxu0 %v1132_v50 }
  0x44   : > { %1030 = vmatprep.subr.bf16.mxu0 %v1133_v51 }
  0x47   : > { %1031 = vmatpush3.bf16.msra.mxu0 %v1134_v52 }
  0x4a   : > { %773 = vmatmul.mubr.bf16.vlgmr.msra.gmra.mrb[4].mxu0 %v1135_v53 }
  0xfd   : > { %v988_v54 = vpop.f32.mrb[0].mxu0 }
  0xfe   : > { %v989_v56 = vpop.f32.mrb[1].mxu0 }
  0xff   : > { %v990_v57 = vadd.f32 %v989_v56, %v988_v54  ;;  %v991_v58 = vpop.f32.mrb[2].mxu0  ;;  %v1010_v59 = vpop.f32.mrb[0].mxu1 }
 0x100   : > { %v992_v61 = vpop.f32.mrb[3].mxu0  ;;  %v1011_v0 = vpop.f32.mrb[1].mxu1 }
 0x101   : > { %v693_v62 = vadd.f32 %v990_v57, %v338_v55  ;;  %v993_v63 = vadd.f32 %v992_v61, %v991_v58  ;;  %v1012_v1 = vadd.f32 %v1011_v0, %v1010_v59  ;;  %v1013_v2 = vpop.f32.mrb[2].mxu1 }
 0x102   : > { %v1014_v4 = vpop.f32.mrb[3].mxu1 }
 0x103   : > { %v696_v3 = vadd.f32 %v993_v63, %v339_v60  ;;  %v734_v5 = vadd.f32 %v1012_v1, %v693_v62  ;;  %v1015_v6 = vadd.f32 %v1014_v4, %v1013_v2 }
 0x105   : > { %v737_v7 = vadd.f32 %v1015_v6, %v696_v3 }
 0x11d   : > { %v1032_v8 = vpop.f32.mrb[4].mxu0 }
 0x11e   : > { %v1033_v9 = vpop.f32.mrb[5].mxu0 }
 0x11f   : > { %v1034_v10 = vadd.f32 %v1033_v9, %v1032_v8  ;;  %v1035_v11 = vpop.f32.mrb[6].mxu0 }
 0x120   : > { %v1036_v12 = vpop.f32.mrb[7].mxu0 }
 0x121   : > { %v775_v13 = vadd.f32 %v1034_v10, %v734_v5  ;;  %v1037_v14 = vadd.f32 %v1036_v12, %v1035_v11 }
 0x123   : > { %v778_v15 = vadd.f32 %v1037_v14, %v737_v7 }
 0x125   : > { %v970_v16 = vpack.c.bf16 %v778_v15, %v775_v13 }
 0x127   : > { %971 = vst [vmem:[%s233_s5] sm:$0xff] %v970_v16  }
 0x128 PF: > { %s13_s16 = sadd.s32 1, %s1176_s16   ;;  %s1424_s12 = smov %s1168_s14 }
 0x129   : > { %p10_p7 = scmp.ge.s32.totalorder %s13_s16, 8   ;;  %s1425_s13 = smov %s1172_s15 }
 0x12a   : > { %s1426_s14 = smov %s1429_s17  ;;  %s1427_s15 = smov %s1433_s18 }
 0x12b   :  { %12 = sbr.rel (!%p10_p7) target bundleno = 3 (0x3), region = 65 }

</bundles_post_ra>
